<compile_context>
chip_gen: v7x
topology: tpu7x:2x2x1
jax: 0.10.0
libtpu: 0.0.40
codegen_flags: <defaults>
</compile_context>

<pallas_src>
import jax
import jax.numpy as jnp
from jax.experimental import pallas as pl
from jax.experimental.pallas import tpu as pltpu


def critic_mlp_kernel(s_ref, a_ref, p_ref,
                      w1s_ref, w1a_ref, w1p_ref, b1_ref,
                      w2_ref, b2_ref,
                      w3_ref, b3_ref,
                      w4_ref, b4_ref,
                      w5_ref, b5_ref,
                      q_ref):
    """One batch tile of the fused 5-layer MLP. Weights are VMEM-resident."""
    wdt = w2_ref.dtype  # compute dtype for the MXU (f32 or bf16); accumulation is f32

    def dense(h_f32, w_ref, b_ref):
        return (jnp.dot(h_f32.astype(w_ref.dtype), w_ref[...],
                        preferred_element_type=jnp.float32)
                + b_ref[...].astype(jnp.float32))

    # Layer 1: concat([s, a, p], axis=1) @ W1  ==  s@W1s + a@W1a + p@W1p
    h = (jnp.dot(s_ref[...].astype(wdt), w1s_ref[...], preferred_element_type=jnp.float32)
         + jnp.dot(a_ref[...].astype(wdt), w1a_ref[...], preferred_element_type=jnp.float32)
         + jnp.dot(p_ref[...].astype(wdt), w1p_ref[...], preferred_element_type=jnp.float32)
         + b1_ref[...].astype(jnp.float32))
    h = jnp.maximum(h, 0.0)
    h = jnp.maximum(dense(h, w2_ref, b2_ref), 0.0)
    h = jnp.maximum(dense(h, w3_ref, b3_ref), 0.0)
    h = jnp.maximum(dense(h, w4_ref, b4_ref), 0.0)
    # final layer: no ReLU. (Output last dim = reward_size < 128 -> masked store;
    # negligible here since the head is tiny.)
    q = dense(h, w5_ref, b5_ref)
    q_ref[...] = q.astype(q_ref.dtype)


def make_critic_params(key, state_size, action_size, reward_size, dtype=jnp.float32):
    """Deterministic PyTorch-style (U(-1/sqrt(fan_in), 1/sqrt(fan_in))) init."""
    D = state_size + action_size + reward_size
    dims = [D, D * 16, D * 32, D * 16, D * 8, reward_size]
    params = []
    for i in range(5):
        fan_in, fan_out = dims[i], dims[i + 1]
        key, kw, kb = jax.random.split(key, 3)
        bound = 1.0 / (fan_in ** 0.5)
        w = jax.random.uniform(kw, (fan_in, fan_out), dtype, minval=-bound, maxval=bound)
        b = jax.random.uniform(kb, (1, fan_out), dtype, minval=-bound, maxval=bound)
        params.append((w, b))
    return params


def critic_forward(state, action, preference, params, *, block_b=256, weights_dtype=None):
    """Pallas forward pass.

    block_b: batch tile (multiple of 8; 128 on v5e, 256 on v6e/v7x recommended).
    weights_dtype: optional cast for weights (e.g. jnp.bfloat16); accumulation
        stays f32 inside the kernel.
    """
    B = state.shape[0]
    state = state.reshape(B, -1).astype(jnp.float32)
    action = action.reshape(B, -1).astype(jnp.float32)
    preference = preference.reshape(B, -1).astype(jnp.float32)

    state_size = state.shape[1]
    action_size = action.shape[1]
    reward_size = params[-1][1].shape[-1]

    # Batch tile: multiple of 8 (sublane), capped by block_b; pad B up to it so
    # every grid step sees a full tile (padded rows are sliced off at the end).
    tm = min(block_b, max(8, 8 * pl.cdiv(B, 8)))
    b_pad = pl.cdiv(B, tm) * tm
    if b_pad != B:
        pad = ((0, b_pad - B), (0, 0))
        state = jnp.pad(state, pad)
        action = jnp.pad(action, pad)
        preference = jnp.pad(preference, pad)

    (w1, b1), (w2, b2), (w3, b3), (w4, b4), (w5, b5) = params
    if weights_dtype is not None:
        w1, w2, w3, w4, w5 = (w.astype(weights_dtype) for w in (w1, w2, w3, w4, w5))
        # biases stay f32: they are added to the f32 accumulator.

    # Row-split W1 so that concat([s, a, p]) @ W1 == s@W1s + a@W1a + p@W1p.
    w1s = w1[:state_size]
    w1a = w1[state_size:state_size + action_size]
    w1p = w1[state_size + action_size:]

    weights = [w1s, w1a, w1p, b1, w2, b2, w3, b3, w4, b4, w5, b5]

    grid = (b_pad // tm,)

    def batch_spec(arr):
        return pl.BlockSpec((tm, arr.shape[1]), lambda i: (i, 0))

    def const_spec(arr):
        # Constant block index -> fetched once, VMEM-resident across grid steps.
        return pl.BlockSpec(arr.shape, lambda i: (0, 0))

    in_specs = [batch_spec(state), batch_spec(action), batch_spec(preference)]
    in_specs += [const_spec(p) for p in weights]

    out = pl.pallas_call(
        critic_mlp_kernel,
        out_shape=jax.ShapeDtypeStruct((b_pad, reward_size), jnp.float32),
        grid=grid,
        in_specs=in_specs,
        out_specs=pl.BlockSpec((tm, reward_size), lambda i: (i, 0)),
        compiler_params=pltpu.CompilerParams(
            dimension_semantics=("parallel",)),  # shards batch tiles across TCs on v7x
    )(state, action, preference, *weights)
    return out[:B]


def critic_forward_ref(state, action, preference, params):
    """Pure-JAX reference for correctness check."""
    B = state.shape[0]
    x = jnp.concatenate(
        [state.reshape(B, -1), action.reshape(B, -1), preference.reshape(B, -1)],
        axis=1,
    )
    for i, (w, b) in enumerate(params):
        x = x @ w + b
        if i < 4:
            x = jnp.maximum(x, 0.0)
    return x


if __name__ == "__main__":
    state_size, action_size, reward_size = 8, 4, 4   # D = 16
    batch = 2

    key = jax.random.PRNGKey(0)
    kp, ks, ka, kr = jax.random.split(key, 4)

    params = make_critic_params(kp, state_size, action_size, reward_size)

    state = jax.random.normal(ks, (batch, state_size), jnp.float32)
    action = jax.random.normal(ka, (batch, action_size), jnp.float32)
    preference = jax.random.normal(kr, (batch, reward_size), jnp.float32)

    # Small batch, f32 weights: exact vs reference.
    q = jax.block_until_ready(critic_forward(state, action, preference, params))
    q_ref = critic_forward_ref(state, action, preference, params)
    assert q.shape == (batch, reward_size)
    assert jnp.allclose(q, q_ref, atol=1e-4, rtol=1e-4), "f32 mismatch vs reference"

    # Larger, non-divisible batch: multiple grid steps + padded last tile.
    B2 = 300
    ks2, ka2, kr2 = jax.random.split(jax.random.PRNGKey(1), 3)
    state2 = jax.random.normal(ks2, (B2, state_size), jnp.float32)
    action2 = jax.random.normal(ka2, (B2, action_size), jnp.float32)
    pref2 = jax.random.normal(kr2, (B2, reward_size), jnp.float32)
    q2 = jax.block_until_ready(
        critic_forward(state2, action2, pref2, params, block_b=128))
    q2_ref = critic_forward_ref(state2, action2, pref2, params)
    assert q2.shape == (B2, reward_size)
    assert jnp.allclose(q2, q2_ref, atol=1e-4, rtol=1e-4), "tiled f32 mismatch vs reference"

    # bf16 weights (halves weight DMA; 2x MXU throughput on v6e/v7x), f32 accumulation.
    q_bf16 = jax.block_until_ready(
        critic_forward(state2, action2, pref2, params,
                       block_b=128, weights_dtype=jnp.bfloat16))
    assert jnp.allclose(q_bf16, q2_ref, atol=5e-2, rtol=5e-2), "bf16 drifted too far"

    print("KERNEL_OK")
</pallas_src>

<mosaic_0001>
module attributes {stable_mosaic.version = 11 : i64} {
  func.func @critic_mlp_kernel(%arg0: i32, %arg1: memref<8x8xf32, #tpu.memory_space<vmem>>, %arg2: memref<8x4xf32, #tpu.memory_space<vmem>>, %arg3: memref<8x4xf32, #tpu.memory_space<vmem>>, %arg4: memref<8x256xf32, #tpu.memory_space<vmem>>, %arg5: memref<4x256xf32, #tpu.memory_space<vmem>>, %arg6: memref<4x256xf32, #tpu.memory_space<vmem>>, %arg7: memref<1x256xf32, #tpu.memory_space<vmem>>, %arg8: memref<256x512xf32, #tpu.memory_space<vmem>>, %arg9: memref<1x512xf32, #tpu.memory_space<vmem>>, %arg10: memref<512x256xf32, #tpu.memory_space<vmem>>, %arg11: memref<1x256xf32, #tpu.memory_space<vmem>>, %arg12: memref<256x128xf32, #tpu.memory_space<vmem>>, %arg13: memref<1x128xf32, #tpu.memory_space<vmem>>, %arg14: memref<128x4xf32, #tpu.memory_space<vmem>>, %arg15: memref<1x4xf32, #tpu.memory_space<vmem>>, %arg16: memref<8x4xf32, #tpu.memory_space<vmem>>) attributes {dimension_semantics = [#tpu.dimension_semantics<parallel>], iteration_bounds = array<i64: 1>, scalar_prefetch = 0 : i64, scratch_operands = 0 : i64, tpu.core_type = #tpu.core_type<tc>, window_params = [{transform_indices = @transform_0, window_bounds = array<i64: 8, 8>}, {transform_indices = @transform_1, window_bounds = array<i64: 8, 4>}, {transform_indices = @transform_2, window_bounds = array<i64: 8, 4>}, {pipeline_mode = #tpu.pipeline_mode<synchronous>, transform_indices = @transform_3, window_bounds = array<i64: 8, 256>}, {pipeline_mode = #tpu.pipeline_mode<synchronous>, transform_indices = @transform_4, window_bounds = array<i64: 4, 256>}, {pipeline_mode = #tpu.pipeline_mode<synchronous>, transform_indices = @transform_5, window_bounds = array<i64: 4, 256>}, {pipeline_mode = #tpu.pipeline_mode<synchronous>, transform_indices = @transform_6, window_bounds = array<i64: 1, 256>}, {pipeline_mode = #tpu.pipeline_mode<synchronous>, transform_indices = @transform_7, window_bounds = array<i64: 256, 512>}, {pipeline_mode = #tpu.pipeline_mode<synchronous>, transform_indices = @transform_8, window_bounds = array<i64: 1, 512>}, {pipeline_mode = #tpu.pipeline_mode<synchronous>, transform_indices = @transform_9, window_bounds = array<i64: 512, 256>}, {pipeline_mode = #tpu.pipeline_mode<synchronous>, transform_indices = @transform_10, window_bounds = array<i64: 1, 256>}, {pipeline_mode = #tpu.pipeline_mode<synchronous>, transform_indices = @transform_11, window_bounds = array<i64: 256, 128>}, {pipeline_mode = #tpu.pipeline_mode<synchronous>, transform_indices = @transform_12, window_bounds = array<i64: 1, 128>}, {pipeline_mode = #tpu.pipeline_mode<synchronous>, transform_indices = @transform_13, window_bounds = array<i64: 128, 4>}, {pipeline_mode = #tpu.pipeline_mode<synchronous>, transform_indices = @transform_14, window_bounds = array<i64: 1, 4>}, {transform_indices = @transform_15, window_bounds = array<i64: 8, 4>}]} {
    %c0 = arith.constant 0 : index
    %c0_0 = arith.constant 0 : index
    %0 = vector.load %arg1[%c0, %c0_0] : memref<8x8xf32, #tpu.memory_space<vmem>>, vector<8x8xf32>
    %c0_1 = arith.constant 0 : index
    %c0_2 = arith.constant 0 : index
    %1 = vector.load %arg4[%c0_1, %c0_2] : memref<8x256xf32, #tpu.memory_space<vmem>>, vector<8x256xf32>
    %cst = arith.constant dense<0.000000e+00> : vector<8x256xf32>
    %2 = tpu.matmul %0, %1, %cst {dimension_numbers = #tpu.dot_dimension_numbers<[1], [0], [0], [1], [0, 0, 1, 1], [], []>} : vector<8x8xf32>, vector<8x256xf32>, vector<8x256xf32> -> vector<8x256xf32>
    %c0_3 = arith.constant 0 : index
    %c0_4 = arith.constant 0 : index
    %3 = vector.load %arg2[%c0_3, %c0_4] : memref<8x4xf32, #tpu.memory_space<vmem>>, vector<8x4xf32>
    %c0_5 = arith.constant 0 : index
    %c0_6 = arith.constant 0 : index
    %4 = vector.load %arg5[%c0_5, %c0_6] : memref<4x256xf32, #tpu.memory_space<vmem>>, vector<4x256xf32>
    %cst_7 = arith.constant dense<0.000000e+00> : vector<8x256xf32>
    %5 = tpu.matmul %3, %4, %cst_7 {dimension_numbers = #tpu.dot_dimension_numbers<[1], [0], [0], [1], [0, 0, 1, 1], [], []>} : vector<8x4xf32>, vector<4x256xf32>, vector<8x256xf32> -> vector<8x256xf32>
    %6 = arith.addf %2, %5 : vector<8x256xf32>
    %c0_8 = arith.constant 0 : index
    %c0_9 = arith.constant 0 : index
    %7 = vector.load %arg3[%c0_8, %c0_9] : memref<8x4xf32, #tpu.memory_space<vmem>>, vector<8x4xf32>
    %c0_10 = arith.constant 0 : index
    %c0_11 = arith.constant 0 : index
    %8 = vector.load %arg6[%c0_10, %c0_11] : memref<4x256xf32, #tpu.memory_space<vmem>>, vector<4x256xf32>
    %cst_12 = arith.constant dense<0.000000e+00> : vector<8x256xf32>
    %9 = tpu.matmul %7, %8, %cst_12 {dimension_numbers = #tpu.dot_dimension_numbers<[1], [0], [0], [1], [0, 0, 1, 1], [], []>} : vector<8x4xf32>, vector<4x256xf32>, vector<8x256xf32> -> vector<8x256xf32>
    %10 = arith.addf %6, %9 : vector<8x256xf32>
    %c0_13 = arith.constant 0 : index
    %c0_14 = arith.constant 0 : index
    %11 = vector.load %arg7[%c0_13, %c0_14] : memref<1x256xf32, #tpu.memory_space<vmem>>, vector<1x256xf32>
    %12 = vector.broadcast %11 : vector<1x256xf32> to vector<8x256xf32>
    %13 = arith.addf %10, %12 : vector<8x256xf32>
    %cst_15 = arith.constant 0.000000e+00 : f32
    %14 = vector.broadcast %cst_15 : f32 to vector<8x256xf32>
    %15 = arith.maximumf %13, %14 : vector<8x256xf32>
    %c0_16 = arith.constant 0 : index
    %c0_17 = arith.constant 0 : index
    %16 = vector.load %arg8[%c0_16, %c0_17] : memref<256x512xf32, #tpu.memory_space<vmem>>, vector<256x512xf32>
    %cst_18 = arith.constant dense<0.000000e+00> : vector<8x512xf32>
    %17 = tpu.matmul %15, %16, %cst_18 {dimension_numbers = #tpu.dot_dimension_numbers<[1], [0], [0], [1], [0, 0, 1, 1], [], []>} : vector<8x256xf32>, vector<256x512xf32>, vector<8x512xf32> -> vector<8x512xf32>
    %c0_19 = arith.constant 0 : index
    %c0_20 = arith.constant 0 : index
    %18 = vector.load %arg9[%c0_19, %c0_20] : memref<1x512xf32, #tpu.memory_space<vmem>>, vector<1x512xf32>
    %19 = vector.broadcast %18 : vector<1x512xf32> to vector<8x512xf32>
    %20 = arith.addf %17, %19 : vector<8x512xf32>
    %cst_21 = arith.constant 0.000000e+00 : f32
    %21 = vector.broadcast %cst_21 : f32 to vector<8x512xf32>
    %22 = arith.maximumf %20, %21 : vector<8x512xf32>
    %c0_22 = arith.constant 0 : index
    %c0_23 = arith.constant 0 : index
    %23 = vector.load %arg10[%c0_22, %c0_23] : memref<512x256xf32, #tpu.memory_space<vmem>>, vector<512x256xf32>
    %cst_24 = arith.constant dense<0.000000e+00> : vector<8x256xf32>
    %24 = tpu.matmul %22, %23, %cst_24 {dimension_numbers = #tpu.dot_dimension_numbers<[1], [0], [0], [1], [0, 0, 1, 1], [], []>} : vector<8x512xf32>, vector<512x256xf32>, vector<8x256xf32> -> vector<8x256xf32>
    %c0_25 = arith.constant 0 : index
    %c0_26 = arith.constant 0 : index
    %25 = vector.load %arg11[%c0_25, %c0_26] : memref<1x256xf32, #tpu.memory_space<vmem>>, vector<1x256xf32>
    %26 = vector.broadcast %25 : vector<1x256xf32> to vector<8x256xf32>
    %27 = arith.addf %24, %26 : vector<8x256xf32>
    %cst_27 = arith.constant 0.000000e+00 : f32
    %28 = vector.broadcast %cst_27 : f32 to vector<8x256xf32>
    %29 = arith.maximumf %27, %28 : vector<8x256xf32>
    %c0_28 = arith.constant 0 : index
    %c0_29 = arith.constant 0 : index
    %30 = vector.load %arg12[%c0_28, %c0_29] : memref<256x128xf32, #tpu.memory_space<vmem>>, vector<256x128xf32>
    %cst_30 = arith.constant dense<0.000000e+00> : vector<8x128xf32>
    %31 = tpu.matmul %29, %30, %cst_30 {dimension_numbers = #tpu.dot_dimension_numbers<[1], [0], [0], [1], [0, 0, 1, 1], [], []>} : vector<8x256xf32>, vector<256x128xf32>, vector<8x128xf32> -> vector<8x128xf32>
    %c0_31 = arith.constant 0 : index
    %c0_32 = arith.constant 0 : index
    %32 = vector.load %arg13[%c0_31, %c0_32] : memref<1x128xf32, #tpu.memory_space<vmem>>, vector<1x128xf32>
    %33 = vector.broadcast %32 : vector<1x128xf32> to vector<8x128xf32>
    %34 = arith.addf %31, %33 : vector<8x128xf32>
    %cst_33 = arith.constant 0.000000e+00 : f32
    %35 = vector.broadcast %cst_33 : f32 to vector<8x128xf32>
    %36 = arith.maximumf %34, %35 : vector<8x128xf32>
    %c0_34 = arith.constant 0 : index
    %c0_35 = arith.constant 0 : index
    %37 = vector.load %arg14[%c0_34, %c0_35] : memref<128x4xf32, #tpu.memory_space<vmem>>, vector<128x4xf32>
    %cst_36 = arith.constant dense<0.000000e+00> : vector<8x4xf32>
    %38 = tpu.matmul %36, %37, %cst_36 {dimension_numbers = #tpu.dot_dimension_numbers<[1], [0], [0], [1], [0, 0, 1, 1], [], []>} : vector<8x128xf32>, vector<128x4xf32>, vector<8x4xf32> -> vector<8x4xf32>
    %c0_37 = arith.constant 0 : index
    %c0_38 = arith.constant 0 : index
    %39 = vector.load %arg15[%c0_37, %c0_38] : memref<1x4xf32, #tpu.memory_space<vmem>>, vector<1x4xf32>
    %40 = vector.broadcast %39 : vector<1x4xf32> to vector<8x4xf32>
    %41 = arith.addf %38, %40 : vector<8x4xf32>
    %c0_39 = arith.constant 0 : index
    %c0_40 = arith.constant 0 : index
    %42 = vector.load %arg16[%c0_39, %c0_40] : memref<8x4xf32, #tpu.memory_space<vmem>>, vector<8x4xf32>
    tpu.vector_store %arg16[%c0_39, %c0_40], %41 {strides = array<i32>} : memref<8x4xf32, #tpu.memory_space<vmem>>, vector<8x4xf32>,
    return
  }
  func.func @transform_0(%arg0: i32) -> (i32, i32) {
    %c0_i32 = arith.constant 0 : i32
    %c0_i32_0 = arith.constant 0 : i32
    return %arg0, %c0_i32 : i32, i32
  }
  func.func @transform_1(%arg0: i32) -> (i32, i32) {
    %c0_i32 = arith.constant 0 : i32
    %c0_i32_0 = arith.constant 0 : i32
    return %arg0, %c0_i32 : i32, i32
  }
  func.func @transform_2(%arg0: i32) -> (i32, i32) {
    %c0_i32 = arith.constant 0 : i32
    %c0_i32_0 = arith.constant 0 : i32
    return %arg0, %c0_i32 : i32, i32
  }
  func.func @transform_3(%arg0: i32) -> (i32, i32) {
    %c0_i32 = arith.constant 0 : i32
    %c0_i32_0 = arith.constant 0 : i32
    %c0_i32_1 = arith.constant 0 : i32
    return %c0_i32, %c0_i32_0 : i32, i32
  }
  func.func @transform_4(%arg0: i32) -> (i32, i32) {
    %c0_i32 = arith.constant 0 : i32
    %c0_i32_0 = arith.constant 0 : i32
    %c0_i32_1 = arith.constant 0 : i32
    return %c0_i32, %c0_i32_0 : i32, i32
  }
  func.func @transform_5(%arg0: i32) -> (i32, i32) {
    %c0_i32 = arith.constant 0 : i32
    %c0_i32_0 = arith.constant 0 : i32
    %c0_i32_1 = arith.constant 0 : i32
    return %c0_i32, %c0_i32_0 : i32, i32
  }
  func.func @transform_6(%arg0: i32) -> (i32, i32) {
    %c0_i32 = arith.constant 0 : i32
    %c0_i32_0 = arith.constant 0 : i32
    %c0_i32_1 = arith.constant 0 : i32
    return %c0_i32, %c0_i32_0 : i32, i32
  }
  func.func @transform_7(%arg0: i32) -> (i32, i32) {
    %c0_i32 = arith.constant 0 : i32
    %c0_i32_0 = arith.constant 0 : i32
    %c0_i32_1 = arith.constant 0 : i32
    return %c0_i32, %c0_i32_0 : i32, i32
  }
  func.func @transform_8(%arg0: i32) -> (i32, i32) {
    %c0_i32 = arith.constant 0 : i32
    %c0_i32_0 = arith.constant 0 : i32
    %c0_i32_1 = arith.constant 0 : i32
    return %c0_i32, %c0_i32_0 : i32, i32
  }
  func.func @transform_9(%arg0: i32) -> (i32, i32) {
    %c0_i32 = arith.constant 0 : i32
    %c0_i32_0 = arith.constant 0 : i32
    %c0_i32_1 = arith.constant 0 : i32
    return %c0_i32, %c0_i32_0 : i32, i32
  }
  func.func @transform_10(%arg0: i32) -> (i32, i32) {
    %c0_i32 = arith.constant 0 : i32
    %c0_i32_0 = arith.constant 0 : i32
    %c0_i32_1 = arith.constant 0 : i32
    return %c0_i32, %c0_i32_0 : i32, i32
  }
  func.func @transform_11(%arg0: i32) -> (i32, i32) {
    %c0_i32 = arith.constant 0 : i32
    %c0_i32_0 = arith.constant 0 : i32
    %c0_i32_1 = arith.constant 0 : i32
    return %c0_i32, %c0_i32_0 : i32, i32
  }
  func.func @transform_12(%arg0: i32) -> (i32, i32) {
    %c0_i32 = arith.constant 0 : i32
    %c0_i32_0 = arith.constant 0 : i32
    %c0_i32_1 = arith.constant 0 : i32
    return %c0_i32, %c0_i32_0 : i32, i32
  }
  func.func @transform_13(%arg0: i32) -> (i32, i32) {
    %c0_i32 = arith.constant 0 : i32
    %c0_i32_0 = arith.constant 0 : i32
    %c0_i32_1 = arith.constant 0 : i32
    return %c0_i32, %c0_i32_0 : i32, i32
  }
  func.func @transform_14(%arg0: i32) -> (i32, i32) {
    %c0_i32 = arith.constant 0 : i32
    %c0_i32_0 = arith.constant 0 : i32
    %c0_i32_1 = arith.constant 0 : i32
    return %c0_i32, %c0_i32_0 : i32, i32
  }
  func.func @transform_15(%arg0: i32) -> (i32, i32) {
    %c0_i32 = arith.constant 0 : i32
    %c0_i32_0 = arith.constant 0 : i32
    return %arg0, %c0_i32 : i32, i32
  }
}

</mosaic_0001>

<bundles_post_ra>
// kernel: tpu_custom_call.1
= control target key start
LH: loop header
LB: loop body
LE: loop exit
PB: predicated region body
PF: predicated region fallthrough
CT: control target
= control target key end

     0   :  { %20 = vsyncpa [#allocation3], 0  ;;  %s1894_s0 = inlined_call_operand.vmem [shape: f32[8,8], index: 0, kind: input, shape index: {}]   ;;  %s1895_s1 = inlined_call_operand.vmem [shape: f32[8,4], index: 1, kind: input, shape index: {}]   ;;  %s1896_s2 = inlined_call_operand.vmem [shape: f32[8,4], index: 2, kind: input, shape index: {}]   ;;  %s1897_s3 = inlined_call_operand.vmem [shape: f32[8,256], index: 3, kind: input, shape index: {}]   ;;  %s1898_s4 = inlined_call_operand.vmem [shape: f32[4,256], index: 4, kind: input, shape index: {}]   ;;  %s1899_s5 = inlined_call_operand.vmem [shape: f32[4,256], index: 5, kind: input, shape index: {}]   ;;  %s1900_s6 = inlined_call_operand.vmem [shape: f32[1,256], index: 6, kind: input, shape index: {}]   ;;  %s1901_s7 = inlined_call_operand.hbm [shape: f32[256,512], index: 7, kind: input, shape index: {}]   ;;  %s1902_s8 = inlined_call_operand.vmem [shape: f32[1,512], index: 8, kind: input, shape index: {}]   ;;  %s1903_s9 = inlined_call_operand.hbm [shape: f32[512,256], index: 9, kind: input, shape index: {}]   ;;  %s1904_s10 = inlined_call_operand.vmem [shape: f32[1,256], index: 10, kind: input, shape index: {}]   ;;  %s1905_s11 = inlined_call_operand.hbm [shape: f32[256,128], index: 11, kind: input, shape index: {}]   ;;  %s1906_s12 = inlined_call_operand.vmem [shape: f32[1,128], index: 12, kind: input, shape index: {}]   ;;  %s1907_s13 = inlined_call_operand.vmem [shape: f32[128,4], index: 13, kind: input, shape index: {}]   ;;  %s1908_s14 = inlined_call_operand.vmem [shape: f32[1,4], index: 14, kind: input, shape index: {}]   ;;  %s1909_s15 = inlined_call_operand.vmem [shape: f32[8,4], index: 15, kind: output, shape index: {}]  }
   0x1   :  { %21 = vsyncpa [#allocation5], 0  ;;  %s1643_s18 = smov [#allocation4]   ;;  %s1573_s22 = scalar_lea.hbm %s1903_s9, 16384 }
   0x2   :  { %s55_s19 = sshll.u32 %s1643_s18, 4  ;;  %p1574_p0 = scmp.ne.s32.totalorder %s1903_s9, %s1573_s22  ;;  %s56_s19 = int_to_ptr.vmem [resolvable:$true] %s55_s19 }
   0x3   :  { %p1577_p1 = scmp.lt.u32.totalorder %s1573_s22, %s1903_s9 }
   0x5   :  { %p1579_p2 = pnand %p1577_p1, %p1574_p0 }
   0x7   :  { %1582 = shalt.err (!%p1579_p2)
}
   0x8   :  { %s1583_s27 = scalar_lea.vmem %s56_s19, 16384  ;;  %p1588_p4 = scmp.lt.s32.totalorder %s56_s19, %s56_s19 }
   0x9   :  { %p1584_p3 = scmp.ne.s32.totalorder %s56_s19, %s1583_s27  ;;  %p1589_p5 = scmp.lt.s32.totalorder %s1583_s27, %s1583_s27 }
   0xb   :  { %p1590_p6 = por %p1589_p5, %p1588_p4 }
   0xd   :  { %p1591_p7 = pnand %p1590_p6, %p1584_p3 }
   0xf   :  { %1594 = shalt.err (!%p1591_p7)
}
  0x10   :  { %s1644_s28 = smov 256   ;;  %s1645_s29 = smov 16  }
  0x11   :  { %61 = dma.hbm_to_vmem [thread:$0]  %s1903_s9, 16384, %s56_s19, [#allocation5], %s1644_s28, %s1644_s28, %s1645_s29  }
  0x12   :  { %s1646_s17 = smov [#allocation2]   ;;  %s1595_s22 = scalar_lea.hbm %s1901_s7, 16384 }
  0x13   :  { %s41_s18 = sshll.u32 %s1646_s17, 4  ;;  %p1596_p8 = scmp.ne.s32.totalorder %s1901_s7, %s1595_s22  ;;  %s42_s18 = int_to_ptr.vmem [resolvable:$true] %s41_s18 }
  0x14   :  { %p1599_p9 = scmp.lt.u32.totalorder %s1595_s22, %s1901_s7 }
  0x16   :  { %p1601_p10 = pnand %p1599_p9, %p1596_p8 }
  0x18   :  { %1604 = shalt.err (!%p1601_p10)
}
  0x19   :  { %s1605_s27 = scalar_lea.vmem %s42_s18, 16384  ;;  %p1610_p12 = scmp.lt.s32.totalorder %s42_s18, %s42_s18 }
  0x1a   :  { %p1606_p11 = scmp.ne.s32.totalorder %s42_s18, %s1605_s27  ;;  %p1611_p13 = scmp.lt.s32.totalorder %s1605_s27, %s1605_s27 }
  0x1c   :  { %p1612_p0 = por %p1611_p13, %p1610_p12 }
  0x1e   :  { %p1613_p1 = pnand %p1612_p0, %p1606_p11 }
  0x20   :  { %1616 = shalt.err (!%p1613_p1)
}
  0x21   :  { %s1647_s9 = smov 512   ;;  %s1648_s19 = smov 32  }
  0x22   :  { %47 = dma.hbm_to_vmem [thread:$0]  %s1901_s7, 16384, %s42_s18, [#allocation3], %s1647_s9, %s1647_s9, %s1648_s19  }
  0x23   :  { %s1649_s30 = smov [#allocation6]   ;;  %s1617_s21 = scalar_lea.hbm %s1905_s11, 4096 }
  0x24   :  { %s69_s16 = sshll.u32 %s1649_s30, 4  ;;  %p1618_p2 = scmp.ne.s32.totalorder %s1905_s11, %s1617_s21  ;;  %s70_s16 = int_to_ptr.vmem [resolvable:$true] %s69_s16 }
  0x25   :  { %p1621_p3 = scmp.lt.u32.totalorder %s1617_s21, %s1905_s11 }
  0x27   :  { %p1623_p4 = pnand %p1621_p3, %p1618_p2 }
  0x29   :  { %1626 = shalt.err (!%p1623_p4)
}
  0x2a   :  { %s1627_s26 = scalar_lea.vmem %s70_s16, 4096  ;;  %p1632_p6 = scmp.lt.s32.totalorder %s70_s16, %s70_s16 }
  0x2b   :  { %p1628_p5 = scmp.ne.s32.totalorder %s70_s16, %s1627_s26  ;;  %p1633_p7 = scmp.lt.s32.totalorder %s1627_s26, %s1627_s26 }
  0x2d   :  { %p1634_p8 = por %p1633_p7, %p1632_p6 }
  0x2f   :  { %p1635_p9 = pnand %p1634_p8, %p1628_p5 }
  0x31   :  { %1638 = shalt.err (!%p1635_p9)
}
  0x32   :  { %s1650_s7 = smov 128   ;;  %s1651_s18 = smov 8  }
  0x33   :  { %75 = dma.hbm_to_vmem [thread:$0]  %s1905_s11, 4096, %s70_s16, [#allocation5], %s1650_s7, %s1650_s7, %s1651_s18  }
  0x34   :  { %1639 = dma.done.wait [#allocation3], 16384  }
  0x35   :  { %1640 = vsyncadd [#allocation3], 4294950912 }
  0x36   :  { %1641 = dma.done.wait [#allocation5], 20480  }
  0x37   :  { %1642 = vsyncadd [#allocation5], 4294946816  ;;  %v1652_v0 = vmov 0.0   ;;  %v95_v1 = vld [vmem:[%s1898_s4] sm:$0xff]  ;;  %vm102_vm0 = vcmask 1043456   ;;  %vm98_vm1 = vcmask 31744  }
  0x38   :  { %171 = vmatprep.mubr.f32.mxu0 %v1652_v0  ;;  %v97_v2 = vcombine.high %v95_v1, %v95_v1  ;;  %v94_v3 = vld [vmem:[%s1895_s1] sm:$0xff]  ;;  %v93_v5 = vld [vmem:[%s1897_s3 + $0x8] sm:$0xff]  ;;  %v356_v20 = vld [vmem:[#allocation2 + $0x18] sm:$0xff]  ;;  %vm178_vm2 = vcmask 64512   ;;  %vm1654_vm3 = vmmov 0  }
  0x39   :  { %v254_v4 = vld [vmem:[%s1899_s5] sm:$0xff]  ;;  %v354_v6 = vld [vmem:[#allocation2 + $0x8] sm:$0xff]  ;;  %v360_v21 = vld [vmem:[#allocation2 + $0x38] sm:$0xff] }
  0x3a   :  { %v358_v7 = vld [vmem:[#allocation2 + $0x28] sm:$0xff]  ;;  %1143 = vmatprep.subr.msk.mxu0 %vm102_vm0, %v97_v2  ;;  %v92_v8 = vld [vmem:[%s1897_s3] sm:$0xff]  ;;  %v256_v9 = vcombine.high %v254_v4, %v254_v4  ;;  %v1303_v30 = vpack.c.bf16 %v360_v21, %v356_v20  ;;  %v355_v37 = vld [vmem:[#allocation2 + $0x10] sm:$0xff] }
  0x3b   :  { %v1239_v10 = vpack.c.bf16 %v358_v7, %v354_v6  ;;  %v353_v11 = vld [vmem:[#allocation2] sm:$0xff]  ;;  %1144 = vmatpush1.msk.msra.mxu0 %vm102_vm0, %v95_v1  ;;  %v362_v14 = vld [vmem:[#allocation2 + $0x48] sm:$0xff]  ;;  %v359_v38 = vld [vmem:[#allocation2 + $0x30] sm:$0xff] }
  0x3c   :  { %v357_v12 = vld [vmem:[#allocation2 + $0x20] sm:$0xff]  ;;  %1145 = vmatmul.mubr.msk.f32.vlgmr.msra.gmra.mrb[0].mxu0 %vm98_vm1, %v94_v3  ;;  %182 = vmatprep.subr.mxu0 %v93_v5  ;;  %v366_v15 = vld [vmem:[#allocation2 + $0x68] sm:$0xff]  ;;  %v364_v39 = vld [vmem:[#allocation2 + $0x58] sm:$0xff]  ;;  %v1305_v46 = vpack.c.bf16 %v359_v38, %v355_v37 }
  0x3d   :  { %v1241_v13 = vpack.c.bf16 %v357_v12, %v353_v11  ;;  %183 = vmatpush1.msra.mxu0 %v92_v8  ;;  %246 = vmatprep.mubr.f32.mxu0 %v1652_v0  ;;  %v1243_v16 = vpack.c.bf16 %v366_v15, %v362_v14  ;;  %v361_v17 = vld [vmem:[#allocation2 + $0x40] sm:$0xff]  ;;  %v370_v19 = vld [vmem:[#allocation2 + $0x88] sm:$0xff]  ;;  %v368_v40 = vld [vmem:[#allocation2 + $0x78] sm:$0xff] }
  0x3e   :  { %v365_v18 = vld [vmem:[#allocation2 + $0x60] sm:$0xff]  ;;  %1147 = vmatprep.subr.msk.mxu0 %vm102_vm0, %v256_v9  ;;  %1240 = vmatprep.subr.bf16.mxu1 %v1239_v10  ;;  %v374_v23 = vld [vmem:[#allocation2 + $0xa8] sm:$0xff]  ;;  %v1307_v49 = vpack.c.bf16 %v368_v40, %v364_v39  ;;  %v363_v50 = vld [vmem:[#allocation2 + $0x50] sm:$0xff] }
  0x3f   :  { %1242 = vmatpush1.bf16.msra.mxu1 %v1241_v13  ;;  %v1245_v22 = vpack.c.bf16 %v365_v18, %v361_v17  ;;  %v1247_v24 = vpack.c.bf16 %v374_v23, %v370_v19  ;;  %v369_v25 = vld [vmem:[#allocation2 + $0x80] sm:$0xff]  ;;  %v378_v28 = vld [vmem:[#allocation2 + $0xc8] sm:$0xff]  ;;  %v367_v51 = vld [vmem:[#allocation2 + $0x70] sm:$0xff] }
  0x40   :  { %1244 = vmatprep.subr.bf16.mxu1 %v1243_v16  ;;  %v373_v26 = vld [vmem:[#allocation2 + $0xa0] sm:$0xff]  ;;  %v382_v29 = vld [vmem:[#allocation2 + $0xe8] sm:$0xff]  ;;  %v372_v52 = vld [vmem:[#allocation2 + $0x98] sm:$0xff]  ;;  %v1309_v58 = vpack.c.bf16 %v367_v51, %v363_v50 }
  0x41   :  { %v91_v27 = vld [vmem:[%s1894_s0] sm:$0xff]  ;;  %v1249_v31 = vpack.c.bf16 %v373_v26, %v369_v25  ;;  %v1251_v32 = vpack.c.bf16 %v382_v29, %v378_v28  ;;  %v386_v35 = vld [vmem:[#allocation2 + $0x108] sm:$0xff]  ;;  %v376_v53 = vld [vmem:[#allocation2 + $0xb8] sm:$0xff] }
  0x42   :  { %v377_v33 = vld [vmem:[#allocation2 + $0xc0] sm:$0xff]  ;;  %v390_v36 = vld [vmem:[#allocation2 + $0x128] sm:$0xff]  ;;  %v1311_v61 = vpack.c.bf16 %v376_v53, %v372_v52  ;;  %v371_v62 = vld [vmem:[#allocation2 + $0x90] sm:$0xff] }
  0x43   :  { %1246 = vmatpush1.bf16.msra.mxu1 %v1245_v22  ;;  %v381_v34 = vld [vmem:[#allocation2 + $0xe0] sm:$0xff]  ;;  %v1255_v42 = vpack.c.bf16 %v390_v36, %v386_v35  ;;  %v394_v47 = vld [vmem:[#allocation2 + $0x148] sm:$0xff]  ;;  %v375_v63 = vld [vmem:[#allocation2 + $0xb0] sm:$0xff] }
  0x44   :  { %1146 = vmatmul.mubr.msk.f32.vlgmr.msra.gmra.mrb[0].mxu0 %vm178_vm2, %v91_v27  ;;  %1248 = vmatprep.subr.bf16.mxu1 %v1247_v24  ;;  %v1253_v41 = vpack.c.bf16 %v381_v34, %v377_v33  ;;  %v385_v43 = vld [vmem:[#allocation2 + $0x100] sm:$0xff]  ;;  %v398_v48 = vld [vmem:[#allocation2 + $0x168] sm:$0xff]  ;;  %v380_v1 = vld [vmem:[#allocation2 + $0xd8] sm:$0xff]  ;;  %v1313_v7 = vpack.c.bf16 %v375_v63, %v371_v62 }
  0x45   :  { %1148 = vmatpush1.msk.msra.mxu0 %vm102_vm0, %v254_v4  ;;  %328 = vmatprep.mubr.f32.mxu0 %v1652_v0  ;;  %v389_v44 = vld [vmem:[#allocation2 + $0x120] sm:$0xff]  ;;  %v1259_v55 = vpack.c.bf16 %v398_v48, %v394_v47  ;;  %v402_v59 = vld [vmem:[#allocation2 + $0x188] sm:$0xff]  ;;  %v384_v2 = vld [vmem:[#allocation2 + $0xf8] sm:$0xff] }
  0x46   :  { %1304 = vmatprep.subr.bf16.mxu0 %v1303_v30  ;;  %v253_v45 = vld [vmem:[%s1896_s2] sm:$0xff]  ;;  %v1257_v54 = vpack.c.bf16 %v389_v44, %v385_v43  ;;  %v406_v60 = vld [vmem:[#allocation2 + $0x1a8] sm:$0xff]  ;;  %v1315_v10 = vpack.c.bf16 %v384_v2, %v380_v1  ;;  %v379_v11 = vld [vmem:[#allocation2 + $0xd0] sm:$0xff] }
  0x47   :  { %1250 = vmatpush1.bf16.msra.mxu1 %v1249_v31  ;;  %v393_v56 = vld [vmem:[#allocation2 + $0x140] sm:$0xff]  ;;  %v1263_v4 = vpack.c.bf16 %v406_v60, %v402_v59  ;;  %v410_v8 = vld [vmem:[#allocation2 + $0x1c8] sm:$0xff]  ;;  %v383_v12 = vld [vmem:[#allocation2 + $0xf0] sm:$0xff] }
  0x48   :  { %1252 = vmatprep.subr.bf16.mxu1 %v1251_v32  ;;  %v397_v57 = vld [vmem:[#allocation2 + $0x160] sm:$0xff]  ;;  %v414_v9 = vld [vmem:[#allocation2 + $0x1e8] sm:$0xff]  ;;  %v388_v13 = vld [vmem:[#allocation2 + $0x118] sm:$0xff]  ;;  %v1317_v19 = vpack.c.bf16 %v383_v12, %v379_v11 }
  0x49   :  { %v1261_v3 = vpack.c.bf16 %v397_v57, %v393_v56  ;;  %v401_v5 = vld [vmem:[#allocation2 + $0x180] sm:$0xff]  ;;  %v392_v14 = vld [vmem:[#allocation2 + $0x138] sm:$0xff]  ;;  %v1267_v16 = vpack.c.bf16 %v414_v9, %v410_v8  ;;  %v418_v20 = vld [vmem:[#allocation2 + $0x208] sm:$0xff] }
  0x4a   :  { %v405_v6 = vld [vmem:[#allocation2 + $0x1a0] sm:$0xff]  ;;  %v422_v21 = vld [vmem:[#allocation2 + $0x228] sm:$0xff]  ;;  %v1319_v22 = vpack.c.bf16 %v392_v14, %v388_v13  ;;  %v387_v23 = vld [vmem:[#allocation2 + $0x110] sm:$0xff] }
  0x4b   :  { %1254 = vmatpush1.bf16.msra.mxu1 %v1253_v41  ;;  %v1265_v15 = vpack.c.bf16 %v405_v6, %v401_v5  ;;  %v409_v17 = vld [vmem:[#allocation2 + $0x1c0] sm:$0xff]  ;;  %v391_v24 = vld [vmem:[#allocation2 + $0x130] sm:$0xff]  ;;  %v396_v25 = vld [vmem:[#allocation2 + $0x158] sm:$0xff]  ;;  %v1271_v28 = vpack.c.bf16 %v422_v21, %v418_v20 }
  0x4c   :  { %1149 = vmatmul.mubr.msk.f32.vlgmr.msra.gmra.mrb[0].mxu0 %vm98_vm1, %v253_v45  ;;  %1256 = vmatprep.subr.bf16.mxu1 %v1255_v42  ;;  %v413_v18 = vld [vmem:[#allocation2 + $0x1e0] sm:$0xff]  ;;  %v400_v26 = vld [vmem:[#allocation2 + $0x178] sm:$0xff]  ;;  %v1321_v31 = vpack.c.bf16 %v391_v24, %v387_v23  ;;  %v426_v32 = vld [vmem:[#allocation2 + $0x248] sm:$0xff] }
  0x4d   :  { %1306 = vmatpush1.bf16.msra.mxu0 %v1305_v46  ;;  %v1269_v27 = vpack.c.bf16 %v413_v18, %v409_v17  ;;  %v417_v29 = vld [vmem:[#allocation2 + $0x200] sm:$0xff]  ;;  %v430_v33 = vld [vmem:[#allocation2 + $0x268] sm:$0xff]  ;;  %v1323_v34 = vpack.c.bf16 %v400_v26, %v396_v25  ;;  %v395_v35 = vld [vmem:[#allocation2 + $0x150] sm:$0xff] }
  0x4e   :  { %1308 = vmatprep.subr.bf16.mxu0 %v1307_v49  ;;  %v421_v30 = vld [vmem:[#allocation2 + $0x220] sm:$0xff]  ;;  %v399_v36 = vld [vmem:[#allocation2 + $0x170] sm:$0xff]  ;;  %v404_v37 = vld [vmem:[#allocation2 + $0x198] sm:$0xff]  ;;  %v1275_v40 = vpack.c.bf16 %v430_v33, %v426_v32 }
  0x4f   :  { %1258 = vmatpush1.bf16.msra.mxu1 %v1257_v54  ;;  %v408_v38 = vld [vmem:[#allocation2 + $0x1b8] sm:$0xff]  ;;  %v1273_v39 = vpack.c.bf16 %v421_v30, %v417_v29  ;;  %v425_v41 = vld [vmem:[#allocation2 + $0x240] sm:$0xff]  ;;  %v1325_v43 = vpack.c.bf16 %v399_v36, %v395_v35  ;;  %v434_v44 = vld [vmem:[#allocation2 + $0x288] sm:$0xff] }
  0x50   :  { %1260 = vmatprep.subr.bf16.mxu1 %v1259_v55  ;;  %v429_v42 = vld [vmem:[#allocation2 + $0x260] sm:$0xff]  ;;  %v438_v45 = vld [vmem:[#allocation2 + $0x2a8] sm:$0xff]  ;;  %v1327_v46 = vpack.c.bf16 %v408_v38, %v404_v37  ;;  %v403_v47 = vld [vmem:[#allocation2 + $0x190] sm:$0xff] }
  0x51   :  { %1310 = vmatpush1.bf16.msra.mxu0 %v1309_v58  ;;  %v407_v48 = vld [vmem:[#allocation2 + $0x1b0] sm:$0xff]  ;;  %v412_v49 = vld [vmem:[#allocation2 + $0x1d8] sm:$0xff]  ;;  %v1277_v51 = vpack.c.bf16 %v429_v42, %v425_v41  ;;  %v1279_v52 = vpack.c.bf16 %v438_v45, %v434_v44  ;;  %v433_v53 = vld [vmem:[#allocation2 + $0x280] sm:$0xff] }
  0x52   :  { %1312 = vmatprep.subr.bf16.mxu0 %v1311_v61  ;;  %v416_v50 = vld [vmem:[#allocation2 + $0x1f8] sm:$0xff]  ;;  %v437_v54 = vld [vmem:[#allocation2 + $0x2a0] sm:$0xff]  ;;  %v1329_v55 = vpack.c.bf16 %v407_v48, %v403_v47  ;;  %v442_v56 = vld [vmem:[#allocation2 + $0x2c8] sm:$0xff] }
  0x53   :  { %1262 = vmatpush1.bf16.msra.mxu1 %v1261_v3  ;;  %v446_v57 = vld [vmem:[#allocation2 + $0x2e8] sm:$0xff]  ;;  %v1331_v58 = vpack.c.bf16 %v416_v50, %v412_v49  ;;  %v411_v59 = vld [vmem:[#allocation2 + $0x1d0] sm:$0xff]  ;;  %v420_v61 = vld [vmem:[#allocation2 + $0x218] sm:$0xff]  ;;  %v1281_v63 = vpack.c.bf16 %v437_v54, %v433_v53 }
  0x54   :  { %1264 = vmatprep.subr.bf16.mxu1 %v1263_v4  ;;  %v415_v60 = vld [vmem:[#allocation2 + $0x1f0] sm:$0xff]  ;;  %v424_v62 = vld [vmem:[#allocation2 + $0x238] sm:$0xff]  ;;  %v1283_v1 = vpack.c.bf16 %v446_v57, %v442_v56  ;;  %v441_v2 = vld [vmem:[#allocation2 + $0x2c0] sm:$0xff] }
  0x55   :  { %1314 = vmatpush1.bf16.msra.mxu0 %v1313_v7  ;;  %v445_v3 = vld [vmem:[#allocation2 + $0x2e0] sm:$0xff]  ;;  %v1333_v4 = vpack.c.bf16 %v415_v60, %v411_v59  ;;  %v450_v5 = vld [vmem:[#allocation2 + $0x308] sm:$0xff]  ;;  %v1335_v7 = vpack.c.bf16 %v424_v62, %v420_v61  ;;  %v419_v8 = vld [vmem:[#allocation2 + $0x210] sm:$0xff] }
  0x56   :  { %1316 = vmatprep.subr.bf16.mxu0 %v1315_v10  ;;  %v454_v6 = vld [vmem:[#allocation2 + $0x328] sm:$0xff]  ;;  %v423_v9 = vld [vmem:[#allocation2 + $0x230] sm:$0xff]  ;;  %v428_v10 = vld [vmem:[#allocation2 + $0x258] sm:$0xff]  ;;  %v1285_v12 = vpack.c.bf16 %v445_v3, %v441_v2 }
  0x57   :  { %1266 = vmatpush1.bf16.msra.mxu1 %v1265_v15  ;;  %v432_v11 = vld [vmem:[#allocation2 + $0x278] sm:$0xff]  ;;  %v1287_v13 = vpack.c.bf16 %v454_v6, %v450_v5  ;;  %v449_v14 = vld [vmem:[#allocation2 + $0x300] sm:$0xff]  ;;  %v458_v17 = vld [vmem:[#allocation2 + $0x348] sm:$0xff] }
  0x58   :  { %1268 = vmatprep.subr.bf16.mxu1 %v1267_v16  ;;  %v453_v15 = vld [vmem:[#allocation2 + $0x320] sm:$0xff]  ;;  %v1337_v16 = vpack.c.bf16 %v423_v9, %v419_v8  ;;  %v462_v18 = vld [vmem:[#allocation2 + $0x368] sm:$0xff]  ;;  %v427_v20 = vld [vmem:[#allocation2 + $0x250] sm:$0xff] }
  0x59   :  { %1318 = vmatpush1.bf16.msra.mxu0 %v1317_v19  ;;  %v1339_v19 = vpack.c.bf16 %v432_v11, %v428_v10  ;;  %v431_v21 = vld [vmem:[#allocation2 + $0x270] sm:$0xff]  ;;  %v440_v23 = vld [vmem:[#allocation2 + $0x2b8] sm:$0xff]  ;;  %v1289_v24 = vpack.c.bf16 %v453_v15, %v449_v14  ;;  %v1291_v25 = vpack.c.bf16 %v462_v18, %v458_v17  ;;  %v457_v26 = vld [vmem:[#allocation2 + $0x340] sm:$0xff] }
  0x5a   :  { %1320 = vmatprep.subr.bf16.mxu0 %v1319_v22  ;;  %v436_v22 = vld [vmem:[#allocation2 + $0x298] sm:$0xff]  ;;  %v466_v29 = vld [vmem:[#allocation2 + $0x388] sm:$0xff]  ;;  %v435_v32 = vld [vmem:[#allocation2 + $0x290] sm:$0xff] }
  0x5b   :  { %1270 = vmatpush1.bf16.msra.mxu1 %v1269_v27  ;;  %v461_v27 = vld [vmem:[#allocation2 + $0x360] sm:$0xff]  ;;  %v470_v30 = vld [vmem:[#allocation2 + $0x3a8] sm:$0xff]  ;;  %v439_v33 = vld [vmem:[#allocation2 + $0x2b0] sm:$0xff] }
  0x5c   :  { %1272 = vmatprep.subr.bf16.mxu1 %v1271_v28  ;;  %v1341_v28 = vpack.c.bf16 %v431_v21, %v427_v20  ;;  %v448_v35 = vld [vmem:[#allocation2 + $0x2f8] sm:$0xff]  ;;  %v1293_v36 = vpack.c.bf16 %v461_v27, %v457_v26  ;;  %v1295_v37 = vpack.c.bf16 %v470_v30, %v466_v29  ;;  %v1345_v38 = vpack.c.bf16 %v439_v33, %v435_v32  ;;  %v447_v41 = vld [vmem:[#allocation2 + $0x2f0] sm:$0xff]  ;;  %v469_v59 = vld [vmem:[#allocation2 + $0x3a0] sm:$0xff] }
  0x5d   :  { %1322 = vmatpush1.bf16.msra.mxu0 %v1321_v31  ;;  %v1343_v31 = vpack.c.bf16 %v440_v23, %v436_v22  ;;  %v452_v42 = vld [vmem:[#allocation2 + $0x318] sm:$0xff]  ;;  %v455_v47 = vld [vmem:[#allocation2 + $0x330] sm:$0xff]  ;;  %v478_v2 = vld [vmem:[#allocation2 + $0x3e8] sm:$0xff] }
  0x5e   :  { %1324 = vmatprep.subr.bf16.mxu0 %v1323_v34  ;;  %v444_v34 = vld [vmem:[#allocation2 + $0x2d8] sm:$0xff]  ;;  %v463_v53 = vld [vmem:[#allocation2 + $0x370] sm:$0xff]  ;;  %v473_v6 = vld [vmem:[#allocation2 + $0x3c0] sm:$0xff] }
  0x5f   :  { %1274 = vmatpush1.bf16.msra.mxu1 %v1273_v39  ;;  %v1347_v39 = vpack.c.bf16 %v448_v35, %v444_v34  ;;  %v460_v48 = vld [vmem:[#allocation2 + $0x358] sm:$0xff]  ;;  %v467_v60 = vld [vmem:[#allocation2 + $0x390] sm:$0xff]  ;;  %v649_v26 = vld [vmem:[#allocation4] sm:$0xff] }
  0x60   :  { %1276 = vmatprep.subr.bf16.mxu1 %v1275_v40  ;;  %v443_v40 = vld [vmem:[#allocation2 + $0x2d0] sm:$0xff]  ;;  %v464_v49 = vld [vmem:[#allocation2 + $0x378] sm:$0xff]  ;;  %v654_v29 = vld [vmem:[#allocation4 + $0x28] sm:$0xff] }
  0x61   :  { %1326 = vmatpush1.bf16.msra.mxu0 %v1325_v43  ;;  %v456_v43 = vld [vmem:[#allocation2 + $0x338] sm:$0xff]  ;;  %v1349_v44 = vpack.c.bf16 %v447_v41, %v443_v40  ;;  %v471_v62 = vld [vmem:[#allocation2 + $0x3b0] sm:$0xff]  ;;  %v653_v35 = vld [vmem:[#allocation4 + $0x20] sm:$0xff] }
  0x62   :  { %1328 = vmatprep.subr.bf16.mxu0 %v1327_v46  ;;  %v1351_v45 = vpack.c.bf16 %v456_v43, %v452_v42  ;;  %v451_v46 = vld [vmem:[#allocation2 + $0x310] sm:$0xff]  ;;  %v468_v54 = vld [vmem:[#allocation2 + $0x398] sm:$0xff]  ;;  %v657_v41 = vld [vmem:[#allocation4 + $0x40] sm:$0xff] }
  0x63   :  { %1278 = vmatpush1.bf16.msra.mxu1 %v1277_v51  ;;  %v1353_v50 = vpack.c.bf16 %v455_v47, %v451_v46  ;;  %v1355_v51 = vpack.c.bf16 %v464_v49, %v460_v48  ;;  %v476_v3 = vld [vmem:[#allocation2 + $0x3d8] sm:$0xff]  ;;  %v475_v10 = vld [vmem:[#allocation2 + $0x3d0] sm:$0xff]  ;;  %v662_v43 = vld [vmem:[#allocation4 + $0x68] sm:$0xff] }
  0x64   :  { %1280 = vmatprep.subr.bf16.mxu1 %v1279_v52  ;;  %v459_v52 = vld [vmem:[#allocation2 + $0x350] sm:$0xff]  ;;  %v480_v5 = vld [vmem:[#allocation2 + $0x3f8] sm:$0xff]  ;;  %v661_v47 = vld [vmem:[#allocation4 + $0x60] sm:$0xff] }
  0x65   :  { %1330 = vmatpush1.bf16.msra.mxu0 %v1329_v55  ;;  %v472_v55 = vld [vmem:[#allocation2 + $0x3b8] sm:$0xff]  ;;  %v1357_v56 = vpack.c.bf16 %v463_v53, %v459_v52  ;;  %v1363_v8 = vpack.c.bf16 %v480_v5, %v476_v3  ;;  %v479_v11 = vld [vmem:[#allocation2 + $0x3f0] sm:$0xff]  ;;  %v666_v49 = vld [vmem:[#allocation4 + $0x88] sm:$0xff] }
  0x66   :  { %1332 = vmatprep.subr.bf16.mxu0 %v1331_v58  ;;  %v1359_v57 = vpack.c.bf16 %v472_v55, %v468_v54  ;;  %v465_v58 = vld [vmem:[#allocation2 + $0x380] sm:$0xff]  ;;  %v652_v14 = vld [vmem:[#allocation4 + $0x18] sm:$0xff]  ;;  %v651_v27 = vld [vmem:[#allocation4 + $0x10] sm:$0xff] }
  0x67   :  { %1282 = vmatpush1.bf16.msra.mxu1 %v1281_v63  ;;  %v1297_v61 = vpack.c.bf16 %v469_v59, %v465_v58  ;;  %v1361_v63 = vpack.c.bf16 %v471_v62, %v467_v60  ;;  %v656_v30 = vld [vmem:[#allocation4 + $0x38] sm:$0xff]  ;;  %v1369_v32 = vpack.c.bf16 %v651_v27, %v649_v26  ;;  %v659_v42 = vld [vmem:[#allocation4 + $0x50] sm:$0xff]  ;;  %v665_v53 = vld [vmem:[#allocation4 + $0x80] sm:$0xff] }
  0x68   :  { %1284 = vmatprep.subr.bf16.mxu1 %v1283_v1  ;;  %v474_v1 = vld [vmem:[#allocation2 + $0x3c8] sm:$0xff]  ;;  %v1371_v34 = vpack.c.bf16 %v656_v30, %v654_v29  ;;  %v663_v48 = vld [vmem:[#allocation4 + $0x70] sm:$0xff]  ;;  %v669_v59 = vld [vmem:[#allocation4 + $0xa0] sm:$0xff] }
  0x69   :  { %1334 = vmatpush1.bf16.msra.mxu0 %v1333_v4  ;;  %v1299_v4 = vpack.c.bf16 %v478_v2, %v474_v1  ;;  %v667_v54 = vld [vmem:[#allocation4 + $0x90] sm:$0xff]  ;;  %v670_v55 = vld [vmem:[#allocation4 + $0xa8] sm:$0xff]  ;;  %v676_v62 = vld [vmem:[#allocation4 + $0xd8] sm:$0xff] }
  0x6a   :  { %1336 = vmatprep.subr.bf16.mxu0 %v1335_v7  ;;  %v477_v7 = vld [vmem:[#allocation2 + $0x3e0] sm:$0xff]  ;;  %v671_v60 = vld [vmem:[#allocation4 + $0xb0] sm:$0xff]  ;;  %v680_v5 = vld [vmem:[#allocation4 + $0xf8] sm:$0xff] }
  0x6b   :  { %1286 = vmatpush1.bf16.msra.mxu1 %v1285_v12  ;;  %v1301_v9 = vpack.c.bf16 %v477_v7, %v473_v6  ;;  %v1365_v12 = vpack.c.bf16 %v479_v11, %v475_v10  ;;  %v673_v2 = vld [vmem:[#allocation4 + $0xc0] sm:$0xff]  ;;  %v675_v3 = vld [vmem:[#allocation4 + $0xd0] sm:$0xff]  ;;  %v682_v10 = vld [vmem:[#allocation4 + $0x108] sm:$0xff] }
  0x6c   :  { %1288 = vmatprep.subr.bf16.mxu1 %v1287_v13  ;;  %v650_v13 = vld [vmem:[#allocation4 + $0x8] sm:$0xff]  ;;  %v1393_v6 = vpack.c.bf16 %v675_v3, %v673_v2  ;;  %v684_v11 = vld [vmem:[#allocation4 + $0x118] sm:$0xff]  ;;  %v689_v29 = vld [vmem:[#allocation4 + $0x140] sm:$0xff] }
  0x6d   :  { %1338 = vmatpush1.bf16.msra.mxu0 %v1337_v16  ;;  %v1367_v15 = vpack.c.bf16 %v652_v14, %v650_v13  ;;  %v339_v16 = vlaneseq  ;;  %v1399_v13 = vpack.c.bf16 %v684_v11, %v682_v10  ;;  %v681_v14 = vld [vmem:[#allocation4 + $0x100] sm:$0xff]  ;;  %v692_v26 = vld [vmem:[#allocation4 + $0x158] sm:$0xff]  ;;  %v691_v30 = vld [vmem:[#allocation4 + $0x150] sm:$0xff] }
  0x6e   :  { %1340 = vmatprep.subr.bf16.mxu0 %v1339_v19  ;;  %v337_v19 = vld [vmem:[%s1900_s6] sm:$0x3]  ;;  %v950_v3 = vld [vmem:[#allocation6 + $0x88] sm:$0xff]  ;;  %v935_v11 = vld [vmem:[#allocation6 + $0x10] sm:$0xff] }
  0x6f   :  { %1290 = vmatpush1.bf16.msra.mxu1 %v1289_v24  ;;  %v1801_v17 = vshrl.u32 %v339_v16, 7  ;;  %v686_v16 = vld [vmem:[#allocation4 + $0x128] sm:$0xff]  ;;  %v949_v2 = vld [vmem:[#allocation6 + $0x80] sm:$0xff] }
  0x70   :  { %1292 = vmatprep.subr.bf16.mxu1 %v1291_v25 }
  0x71   :  { %1342 = vmatpush1.bf16.msra.mxu0 %v1341_v28  ;;  %v1804_v18 = vsub.s32 0, %v1801_v17  ;;  %v1810_v20 = vsub.s32 1, %v1801_v17 }
  0x72   :  { %1344 = vmatprep.subr.bf16.mxu0 %v1343_v31 }
  0x73   :  { %1294 = vmatpush1.bf16.msra.mxu1 %v1293_v36  ;;  %v342_v21 = vrot.slane %v337_v19, %v1804_v18  ;;  %v346_v22 = vrot.slane %v337_v19, %v1810_v20  ;;  %v655_v36 = vld [vmem:[#allocation4 + $0x30] sm:$0xff]  ;;  %v688_v19 = vld [vmem:[#allocation4 + $0x138] sm:$0xff] }
  0x74   :  { %1296 = vmatprep.subr.bf16.mxu1 %v1295_v37  ;;  %v658_v37 = vld [vmem:[#allocation4 + $0x48] sm:$0xff] }
  0x75   :  { %1346 = vmatpush1.bf16.msra.mxu0 %v1345_v38  ;;  %v660_v38 = vld [vmem:[#allocation4 + $0x58] sm:$0xff] }
  0x76   :  { %1348 = vmatprep.subr.bf16.mxu0 %v1347_v39  ;;  %v1373_v39 = vpack.c.bf16 %v655_v36, %v653_v35  ;;  %v1375_v40 = vpack.c.bf16 %v660_v38, %v658_v37  ;;  %v693_v35 = vld [vmem:[#allocation4 + $0x160] sm:$0xff]  ;;  %v695_v36 = vld [vmem:[#allocation4 + $0x170] sm:$0xff]  ;;  %v698_v37 = vld [vmem:[#allocation4 + $0x188] sm:$0xff] }
  0x77   :  { %1298 = vmatpush1.bf16.msra.mxu1 %v1297_v61  ;;  %v674_v61 = vld [vmem:[#allocation4 + $0xc8] sm:$0xff]  ;;  %v700_v38 = vld [vmem:[#allocation4 + $0x198] sm:$0xff] }
  0x78   :  { %1300 = vmatprep.subr.bf16.mxu1 %v1299_v4  ;;  %v1391_v1 = vpack.c.bf16 %v676_v62, %v674_v61  ;;  %v678_v4 = vld [vmem:[#allocation4 + $0xe8] sm:$0xff] }
  0x79   :  { %1350 = vmatpush1.bf16.msra.mxu0 %v1349_v44  ;;  %v664_v44 = vld [vmem:[#allocation4 + $0x78] sm:$0xff]  ;;  %v1395_v7 = vpack.c.bf16 %v680_v5, %v678_v4  ;;  %v714_v62 = vld [vmem:[#allocation4 + $0x208] sm:$0xff]  ;;  %v933_v4 = vld [vmem:[#allocation6] sm:$0xff]  ;;  %v1495_v5 = vpack.c.bf16 %v950_v3, %v949_v2 }
  0x7a   :  { %1352 = vmatprep.subr.bf16.mxu0 %v1351_v45  ;;  %v1377_v45 = vpack.c.bf16 %v659_v42, %v657_v41  ;;  %v1379_v46 = vpack.c.bf16 %v664_v44, %v662_v43  ;;  %v697_v41 = vld [vmem:[#allocation4 + $0x180] sm:$0xff]  ;;  %v699_v42 = vld [vmem:[#allocation4 + $0x190] sm:$0xff]  ;;  %v702_v43 = vld [vmem:[#allocation4 + $0x1a8] sm:$0xff] }
  0x7b   :  { %1302 = vmatpush1.bf16.msra.mxu1 %v1301_v9  ;;  %v679_v9 = vld [vmem:[#allocation4 + $0xf0] sm:$0xff]  ;;  %v704_v44 = vld [vmem:[#allocation4 + $0x1b8] sm:$0xff] }
  0x7c   :  { %1368 = vmatprep.subr.bf16.mxu1 %v1367_v15  ;;  %v683_v15 = vld [vmem:[#allocation4 + $0x110] sm:$0xff] }
  0x7d   :  { %1354 = vmatpush1.bf16.msra.mxu0 %v1353_v50  ;;  %v668_v50 = vld [vmem:[#allocation4 + $0x98] sm:$0xff]  ;;  %v719_v2 = vld [vmem:[#allocation4 + $0x230] sm:$0xff] }
  0x7e   :  { %1356 = vmatprep.subr.bf16.mxu0 %v1355_v51  ;;  %v1381_v51 = vpack.c.bf16 %v663_v48, %v661_v47  ;;  %v1383_v52 = vpack.c.bf16 %v668_v50, %v666_v49  ;;  %v701_v47 = vld [vmem:[#allocation4 + $0x1a0] sm:$0xff]  ;;  %v703_v48 = vld [vmem:[#allocation4 + $0x1b0] sm:$0xff]  ;;  %v706_v49 = vld [vmem:[#allocation4 + $0x1c8] sm:$0xff] }
  0x7f   :  { %v708_v50 = vld [vmem:[#allocation4 + $0x1d8] sm:$0xff] }
  0x81   :  { %1358 = vmatpush1.bf16.msra.mxu0 %v1357_v56  ;;  %v672_v56 = vld [vmem:[#allocation4 + $0xb8] sm:$0xff] }
  0x82   :  { %1360 = vmatprep.subr.bf16.mxu0 %v1359_v57  ;;  %v1385_v57 = vpack.c.bf16 %v667_v54, %v665_v53  ;;  %v1387_v58 = vpack.c.bf16 %v672_v56, %v670_v55  ;;  %v705_v53 = vld [vmem:[#allocation4 + $0x1c0] sm:$0xff]  ;;  %v707_v54 = vld [vmem:[#allocation4 + $0x1d0] sm:$0xff]  ;;  %v710_v56 = vld [vmem:[#allocation4 + $0x1e8] sm:$0xff] }
  0x83   :  { %v1425_v55 = vpack.c.bf16 %v707_v54, %v705_v53  ;;  %v713_v54 = vld [vmem:[#allocation4 + $0x200] sm:$0xff] }
  0x85   :  { %1362 = vmatpush1.bf16.msra.mxu0 %v1361_v63  ;;  %v1389_v63 = vpack.c.bf16 %v671_v60, %v669_v59  ;;  %v709_v59 = vld [vmem:[#allocation4 + $0x1e0] sm:$0xff]  ;;  %v711_v60 = vld [vmem:[#allocation4 + $0x1f0] sm:$0xff] }
  0x86   :  { %1364 = vmatprep.subr.bf16.mxu0 %v1363_v8  ;;  %v677_v8 = vld [vmem:[#allocation4 + $0xe0] sm:$0xff]  ;;  %v1429_v61 = vpack.c.bf16 %v711_v60, %v709_v59  ;;  %v720_v59 = vld [vmem:[#allocation4 + $0x238] sm:$0xff] }
  0x89   :  { %1366 = vmatpush1.bf16.msra.mxu0 %v1365_v12  ;;  %v1397_v12 = vpack.c.bf16 %v679_v9, %v677_v8  ;;  %v952_v8 = vld [vmem:[#allocation6 + $0x98] sm:$0xff] }
  0x8a   :  { %1496 = vmatprep.subr.bf16.mxu0 %v1495_v5  ;;  %v724_v5 = vld [vmem:[#allocation4 + $0x258] sm:$0xff] }
 0x11f   :  { %v330_v23 = vpop.f32.mrb[0].mxu0 }
 0x120   :  { %v349_v24 = vadd.f32 %v342_v21, %v330_v23  ;;  %v332_v25 = vpop.f32.mrb[1].mxu0  ;;  %v1401_v21 = vpack.c.bf16 %v683_v15, %v681_v14  ;;  %v685_v23 = vld [vmem:[#allocation4 + $0x120] sm:$0xff]  ;;  %v954_v14 = vld [vmem:[#allocation6 + $0xa8] sm:$0xff] }
 0x121   :  { %v350_v28 = vadd.f32 %v346_v22, %v332_v25  ;;  %v1403_v22 = vpack.c.bf16 %v688_v19, %v686_v16  ;;  %v690_v25 = vld [vmem:[#allocation4 + $0x148] sm:$0xff]  ;;  %v937_v19 = vld [vmem:[#allocation6 + $0x20] sm:$0xff] }
 0x122   :  { %v351_v33 = vmax.f32 %v349_v24, 0.0  ;;  %v687_v24 = vld [vmem:[#allocation4 + $0x130] sm:$0xff] }
 0x123   :  { %v352_v31 = vmax.f32 %v350_v28, 0.0  ;;  %v1405_v27 = vpack.c.bf16 %v687_v24, %v685_v23  ;;  %v1407_v28 = vpack.c.bf16 %v692_v26, %v690_v25  ;;  %v956_v23 = vld [vmem:[#allocation6 + $0xb8] sm:$0xff]  ;;  %v939_v26 = vld [vmem:[#allocation6 + $0x30] sm:$0xff] }
 0x125   :  { %567 = vmatprep.mubr.f32.mxu1 %v352_v31  ;;  %638 = vmatprep.mubr.f32.mxu0 %v352_v31  ;;  %v694_v31 = vld [vmem:[#allocation4 + $0x168] sm:$0xff] }
 0x126   :  { %568 = vmatmul.mubr.f32.vlgmr.msra.gmra.mrb[0].mxu1 %v351_v33  ;;  %639 = vmatmul.mubr.f32.vlgmr.msra.gmra.mrb[2].mxu0 %v351_v33  ;;  %v1409_v33 = vpack.c.bf16 %v691_v30, %v689_v29  ;;  %v958_v29 = vld [vmem:[#allocation6 + $0xc8] sm:$0xff] }
 0x127   :  { %1370 = vmatpush1.bf16.msra.mxu1 %v1369_v32  ;;  %v696_v32 = vld [vmem:[#allocation4 + $0x178] sm:$0xff] }
 0x128   :  { %1372 = vmatprep.subr.bf16.mxu1 %v1371_v34  ;;  %v1411_v34 = vpack.c.bf16 %v696_v32, %v694_v31  ;;  %v941_v32 = vld [vmem:[#allocation6 + $0x40] sm:$0xff] }
 0x12b   :  { %1374 = vmatpush1.bf16.msra.mxu1 %v1373_v39  ;;  %v1413_v39 = vpack.c.bf16 %v695_v36, %v693_v35  ;;  %v960_v35 = vld [vmem:[#allocation6 + $0xd8] sm:$0xff] }
 0x12c   :  { %1376 = vmatprep.subr.bf16.mxu1 %v1375_v40  ;;  %v1415_v40 = vpack.c.bf16 %v700_v38, %v698_v37  ;;  %v943_v38 = vld [vmem:[#allocation6 + $0x50] sm:$0xff] }
 0x12f   :  { %1378 = vmatpush1.bf16.msra.mxu1 %v1377_v45  ;;  %v1417_v45 = vpack.c.bf16 %v699_v42, %v697_v41  ;;  %v962_v41 = vld [vmem:[#allocation6 + $0xe8] sm:$0xff] }
 0x130   :  { %1380 = vmatprep.subr.bf16.mxu1 %v1379_v46  ;;  %v1419_v46 = vpack.c.bf16 %v704_v44, %v702_v43  ;;  %v1817_v44 = vld [vmem:[%s1902_s8] sm:$0xf] }
 0x133   :  { %1382 = vmatpush1.bf16.msra.mxu1 %v1381_v51  ;;  %v1421_v51 = vpack.c.bf16 %v703_v48, %v701_v47  ;;  %v490_v47 = vrot.slane %v1817_v44, %v1810_v20 }
 0x134   :  { %1384 = vmatprep.subr.bf16.mxu1 %v1383_v52  ;;  %v1423_v52 = vpack.c.bf16 %v708_v50, %v706_v49 }
 0x137   :  { %1386 = vmatpush1.bf16.msra.mxu1 %v1385_v57  ;;  %v712_v57 = vld [vmem:[#allocation4 + $0x1f8] sm:$0xff] }
 0x138   :  { %1388 = vmatprep.subr.bf16.mxu1 %v1387_v58  ;;  %v1427_v58 = vpack.c.bf16 %v712_v57, %v710_v56 }
 0x13b   :  { %1390 = vmatpush1.bf16.msra.mxu1 %v1389_v63  ;;  %v716_v63 = vld [vmem:[#allocation4 + $0x218] sm:$0xff] }
 0x13c   :  { %1392 = vmatprep.subr.bf16.mxu1 %v1391_v1  ;;  %v1431_v1 = vpack.c.bf16 %v716_v63, %v714_v62 }
 0x13f   :  { %1394 = vmatpush1.bf16.msra.mxu1 %v1393_v6  ;;  %v934_v6 = vld [vmem:[#allocation6 + $0x8] sm:$0xff] }
 0x140   :  { %1396 = vmatprep.subr.bf16.mxu1 %v1395_v7  ;;  %v951_v7 = vld [vmem:[#allocation6 + $0x90] sm:$0xff]  ;;  %v1497_v9 = vpack.c.bf16 %v934_v6, %v933_v4  ;;  %v722_v4 = vld [vmem:[#allocation4 + $0x248] sm:$0xff] }
 0x141   :  { %v1499_v10 = vpack.c.bf16 %v952_v8, %v951_v7  ;;  %v1439_v7 = vpack.c.bf16 %v724_v5, %v722_v4  ;;  %v721_v8 = vld [vmem:[#allocation4 + $0x240] sm:$0xff]  ;;  %v759_v5 = vld [vmem:[#allocation4 + $0x370] sm:$0xff] }
 0x142   :  { %1498 = vmatpush3.bf16.msra.mxu0 %v1497_v9  ;;  %v723_v9 = vld [vmem:[#allocation4 + $0x250] sm:$0xff]  ;;  %v757_v4 = vld [vmem:[#allocation4 + $0x360] sm:$0xff] }
 0x143   :  { %1398 = vmatpush1.bf16.msra.mxu1 %v1397_v12  ;;  %v936_v12 = vld [vmem:[#allocation6 + $0x18] sm:$0xff]  ;;  %1500 = vmatprep.subr.bf16.mxu0 %v1499_v10  ;;  %v726_v10 = vld [vmem:[#allocation4 + $0x268] sm:$0xff] }
 0x144   :  { %1400 = vmatprep.subr.bf16.mxu1 %v1399_v13  ;;  %v953_v13 = vld [vmem:[#allocation6 + $0xa0] sm:$0xff]  ;;  %v1501_v15 = vpack.c.bf16 %v936_v12, %v935_v11  ;;  %v728_v11 = vld [vmem:[#allocation4 + $0x278] sm:$0xff]  ;;  %v1441_v12 = vpack.c.bf16 %v723_v9, %v721_v8  ;;  %v1477_v8 = vpack.c.bf16 %v759_v5, %v757_v4  ;;  %v1052_v4 = vld [vmem:[%s1907_s13 + $0x48] sm:$0xff] }
 0x145   :  { %v1503_v16 = vpack.c.bf16 %v954_v14, %v953_v13  ;;  %v1443_v13 = vpack.c.bf16 %v728_v11, %v726_v10  ;;  %v725_v14 = vld [vmem:[#allocation4 + $0x260] sm:$0xff]  ;;  %v763_v11 = vld [vmem:[#allocation4 + $0x390] sm:$0xff] }
 0x146   :  { %1502 = vmatpush3.bf16.msra.mxu0 %v1501_v15  ;;  %v727_v15 = vld [vmem:[#allocation4 + $0x270] sm:$0xff]  ;;  %v761_v10 = vld [vmem:[#allocation4 + $0x380] sm:$0xff] }
 0x147   :  { %1402 = vmatpush1.bf16.msra.mxu1 %v1401_v21  ;;  %v938_v21 = vld [vmem:[#allocation6 + $0x28] sm:$0xff]  ;;  %1504 = vmatprep.subr.bf16.mxu0 %v1503_v16 }
 0x148   :  { %1404 = vmatprep.subr.bf16.mxu1 %v1403_v22  ;;  %v955_v22 = vld [vmem:[#allocation6 + $0xb0] sm:$0xff]  ;;  %v1505_v24 = vpack.c.bf16 %v938_v21, %v937_v19  ;;  %v730_v16 = vld [vmem:[#allocation4 + $0x288] sm:$0xff]  ;;  %v732_v19 = vld [vmem:[#allocation4 + $0x298] sm:$0xff]  ;;  %v1445_v21 = vpack.c.bf16 %v727_v15, %v725_v14  ;;  %v1481_v14 = vpack.c.bf16 %v763_v11, %v761_v10 }
 0x149   :  { %v1507_v25 = vpack.c.bf16 %v956_v23, %v955_v22  ;;  %v1447_v22 = vpack.c.bf16 %v732_v19, %v730_v16  ;;  %v729_v23 = vld [vmem:[#allocation4 + $0x280] sm:$0xff]  ;;  %v767_v19 = vld [vmem:[#allocation4 + $0x3b0] sm:$0xff]  ;;  %v1056_v10 = vld [vmem:[%s1907_s13 + $0x68] sm:$0xff] }
 0x14a   :  { %1506 = vmatpush3.bf16.msra.mxu0 %v1505_v24  ;;  %v731_v24 = vld [vmem:[#allocation4 + $0x290] sm:$0xff]  ;;  %v765_v16 = vld [vmem:[#allocation4 + $0x3a0] sm:$0xff] }
 0x14b   :  { %1406 = vmatpush1.bf16.msra.mxu1 %v1405_v27  ;;  %v940_v27 = vld [vmem:[#allocation6 + $0x38] sm:$0xff]  ;;  %1508 = vmatprep.subr.bf16.mxu0 %v1507_v25  ;;  %v734_v25 = vld [vmem:[#allocation4 + $0x2a8] sm:$0xff] }
 0x14c   :  { %1408 = vmatprep.subr.bf16.mxu1 %v1407_v28  ;;  %v957_v28 = vld [vmem:[#allocation6 + $0xc0] sm:$0xff]  ;;  %v1509_v30 = vpack.c.bf16 %v940_v27, %v939_v26  ;;  %v736_v26 = vld [vmem:[#allocation4 + $0x2b8] sm:$0xff]  ;;  %v1449_v27 = vpack.c.bf16 %v731_v24, %v729_v23  ;;  %v1485_v23 = vpack.c.bf16 %v767_v19, %v765_v16  ;;  %v493_v24 = vsub.s32 2, %v1801_v17 }
 0x14d   :  { %v1511_v31 = vpack.c.bf16 %v958_v29, %v957_v28  ;;  %v1451_v28 = vpack.c.bf16 %v736_v26, %v734_v25  ;;  %v733_v29 = vld [vmem:[#allocation4 + $0x2a0] sm:$0xff] }
 0x14e   :  { %1510 = vmatpush3.bf16.msra.mxu0 %v1509_v30  ;;  %v735_v30 = vld [vmem:[#allocation4 + $0x2b0] sm:$0xff]  ;;  %v769_v26 = vld [vmem:[#allocation4 + $0x3c0] sm:$0xff] }
 0x14f   :  { %1410 = vmatpush1.bf16.msra.mxu1 %v1409_v33  ;;  %v942_v33 = vld [vmem:[#allocation6 + $0x48] sm:$0xff]  ;;  %1512 = vmatprep.subr.bf16.mxu0 %v1511_v31  ;;  %v1150_v16 = vld [vmem:[%s1906_s12] ss:$0 sm:$0xff] }
 0x150   :  { %1412 = vmatprep.subr.bf16.mxu1 %v1411_v34  ;;  %v959_v34 = vld [vmem:[#allocation6 + $0xd0] sm:$0xff]  ;;  %v1513_v36 = vpack.c.bf16 %v942_v33, %v941_v32  ;;  %v738_v31 = vld [vmem:[#allocation4 + $0x2c8] sm:$0xff]  ;;  %v740_v32 = vld [vmem:[#allocation4 + $0x2d8] sm:$0xff]  ;;  %v1453_v33 = vpack.c.bf16 %v735_v30, %v733_v29 }
 0x151   :  { %v1515_v37 = vpack.c.bf16 %v960_v35, %v959_v34  ;;  %v1455_v34 = vpack.c.bf16 %v740_v32, %v738_v31  ;;  %v737_v35 = vld [vmem:[#allocation4 + $0x2c0] sm:$0xff]  ;;  %v776_v29 = vld [vmem:[#allocation4 + $0x3f8] sm:$0xff]  ;;  %v494_v31 = vrot.slane %v1817_v44, %v493_v24 }
 0x152   :  { %1514 = vmatpush3.bf16.msra.mxu0 %v1513_v36  ;;  %v739_v36 = vld [vmem:[#allocation4 + $0x2d0] sm:$0xff]  ;;  %v1151_v24 = vld [vmem:[%s1908_s14] ss:$0 sm:$0xff] }
 0x153   :  { %1414 = vmatpush1.bf16.msra.mxu1 %v1413_v39  ;;  %v944_v39 = vld [vmem:[#allocation6 + $0x58] sm:$0xff]  ;;  %1516 = vmatprep.subr.bf16.mxu0 %v1515_v37  ;;  %v742_v37 = vld [vmem:[#allocation4 + $0x2e8] sm:$0xff] }
 0x154   :  { %1416 = vmatprep.subr.bf16.mxu1 %v1415_v40  ;;  %v961_v40 = vld [vmem:[#allocation6 + $0xe0] sm:$0xff]  ;;  %v1517_v42 = vpack.c.bf16 %v944_v39, %v943_v38  ;;  %v744_v38 = vld [vmem:[#allocation4 + $0x2f8] sm:$0xff]  ;;  %v1457_v39 = vpack.c.bf16 %v739_v36, %v737_v35 }
 0x155   :  { %v1519_v43 = vpack.c.bf16 %v962_v41, %v961_v40  ;;  %v1459_v40 = vpack.c.bf16 %v744_v38, %v742_v37  ;;  %v741_v41 = vld [vmem:[#allocation4 + $0x2e0] sm:$0xff]  ;;  %v946_v38 = vld [vmem:[#allocation6 + $0x68] sm:$0xff] }
 0x156   :  { %1518 = vmatpush3.bf16.msra.mxu0 %v1517_v42  ;;  %v743_v42 = vld [vmem:[#allocation4 + $0x2f0] sm:$0xff]  ;;  %v945_v37 = vld [vmem:[#allocation6 + $0x60] sm:$0xff] }
 0x157   :  { %1418 = vmatpush1.bf16.msra.mxu1 %v1417_v45  ;;  %1520 = vmatprep.subr.bf16.mxu0 %v1519_v43  ;;  %v497_v45 = vsub.s32 3, %v1801_v17  ;;  %v746_v43 = vld [vmem:[#allocation4 + $0x308] sm:$0xff] }
 0x158   :  { %1420 = vmatprep.subr.bf16.mxu1 %v1419_v46  ;;  %v486_v46 = vrot.slane %v1817_v44, %v1804_v18 }
 0x159   :  { %v498_v48 = vrot.slane %v1817_v44, %v497_v45  ;;  %v748_v45 = vld [vmem:[#allocation4 + $0x318] sm:$0xff]  ;;  %v947_v44 = vld [vmem:[#allocation6 + $0x70] sm:$0xff] }
 0x15b   :  { %1422 = vmatpush1.bf16.msra.mxu1 %v1421_v51 }
 0x15c   :  { %1424 = vmatprep.subr.bf16.mxu1 %v1423_v52 }
 0x15f   :  { %1426 = vmatpush1.bf16.msra.mxu1 %v1425_v55  ;;  %v715_v55 = vld [vmem:[#allocation4 + $0x210] sm:$0xff] }
 0x160   :  { %1428 = vmatprep.subr.bf16.mxu1 %v1427_v58  ;;  %v718_v58 = vld [vmem:[#allocation4 + $0x228] sm:$0xff] }
 0x161   :  { %v1435_v63 = vpack.c.bf16 %v720_v59, %v718_v58  ;;  %v756_v58 = vld [vmem:[#allocation4 + $0x358] sm:$0xff] }
 0x163   :  { %1430 = vmatpush1.bf16.msra.mxu1 %v1429_v61  ;;  %v1433_v61 = vpack.c.bf16 %v715_v55, %v713_v54  ;;  %v749_v55 = vld [vmem:[#allocation4 + $0x320] sm:$0xff] }
 0x164   :  { %1432 = vmatprep.subr.bf16.mxu1 %v1431_v1  ;;  %v717_v1 = vld [vmem:[#allocation4 + $0x220] sm:$0xff] }
 0x165   :  { %v1437_v6 = vpack.c.bf16 %v719_v2, %v717_v1  ;;  %v760_v1 = vld [vmem:[#allocation4 + $0x378] sm:$0xff] }
 0x1f9   :  { %v569_v49 = vpop.f32.mrb[0].mxu1  ;;  %v1825_v50 = vpop.f32.mrb[2].mxu0 }
 0x1fa   :  { %v570_v51 = vadd.f32 %v569_v49, %v486_v46  ;;  %v571_v52 = vpop.f32.mrb[1].mxu1  ;;  %v642_v53 = vpop.f32.mrb[3].mxu0  ;;  %v1461_v46 = vpack.c.bf16 %v743_v42, %v741_v41  ;;  %v747_v49 = vld [vmem:[#allocation4 + $0x310] sm:$0xff]  ;;  %v641_v36 = vadd.f32 %v1825_v50, %v494_v31  ;;  %v964_v41 = vld [vmem:[#allocation6 + $0xf8] sm:$0xff]  ;;  %v777_v50 = vld [vmem:[%s1904_s10] sm:$0x3] }
 0x1fb   :  { %v572_v56 = vadd.f32 %v571_v52, %v490_v47  ;;  %v643_v57 = vadd.f32 %v642_v53, %v498_v48  ;;  %v1463_v47 = vpack.c.bf16 %v748_v45, %v746_v43  ;;  %v745_v48 = vld [vmem:[#allocation4 + $0x300] sm:$0xff]  ;;  %v752_v52 = vld [vmem:[#allocation4 + $0x338] sm:$0xff] }
 0x1fc   :  { %v645_v62 = vmax.f32 %v570_v51, 0.0  ;;  %v750_v51 = vld [vmem:[#allocation4 + $0x328] sm:$0xff]  ;;  %v1465_v53 = vpack.c.bf16 %v747_v49, %v745_v48  ;;  %v647_v17 = vmax.f32 %v641_v36, 0.0  ;;  %v948_v43 = vld [vmem:[#allocation6 + $0x78] sm:$0xff]  ;;  %v786_v48 = vrot.slane %v777_v50, %v1810_v20 }
 0x1fd   :  { %v646_v60 = vmax.f32 %v572_v56, 0.0  ;;  %v648_v3 = vmax.f32 %v643_v57, 0.0  ;;  %v1467_v54 = vpack.c.bf16 %v752_v52, %v750_v51  ;;  %v751_v56 = vld [vmem:[#allocation4 + $0x330] sm:$0xff]  ;;  %v754_v57 = vld [vmem:[#allocation4 + $0x348] sm:$0xff]  ;;  %v1525_v45 = vpack.c.bf16 %v948_v43, %v947_v44  ;;  %v1046_v20 = vld [vmem:[%s1907_s13 + $0x18] sm:$0xff] }
 0x1fe   :  { %v1469_v59 = vpack.c.bf16 %v751_v56, %v749_v55 }
 0x1ff   :  { %853 = vmatprep.mubr.f32.mxu1 %v646_v60  ;;  %v1471_v60 = vpack.c.bf16 %v756_v58, %v754_v57 }
 0x200   :  { %854 = vmatmul.mubr.f32.vlgmr.msra.gmra.mrb[2].mxu1 %v645_v62  ;;  %v755_v62 = vld [vmem:[#allocation4 + $0x350] sm:$0xff] }
 0x201   :  { %1434 = vmatpush1.bf16.msra.mxu1 %v1433_v61  ;;  %924 = vmatprep.mubr.f32.mxu1 %v648_v3  ;;  %v753_v61 = vld [vmem:[#allocation4 + $0x340] sm:$0xff] }
 0x202   :  { %1436 = vmatprep.subr.bf16.mxu1 %v1435_v63  ;;  %v758_v63 = vld [vmem:[#allocation4 + $0x368] sm:$0xff]  ;;  %v1473_v2 = vpack.c.bf16 %v755_v62, %v753_v61 }
 0x203   :  { %v1475_v3 = vpack.c.bf16 %v760_v1, %v758_v63  ;;  %v1048_v61 = vld [vmem:[%s1907_s13 + $0x28] sm:$0xff]  ;;  %v1049_v63 = vld [vmem:[%s1907_s13 + $0x30] sm:$0xff]  ;;  %v1050_v1 = vld [vmem:[%s1907_s13 + $0x38] sm:$0xff] }
 0x205   :  { %1438 = vmatpush1.bf16.msra.mxu1 %v1437_v6  ;;  %v762_v6 = vld [vmem:[#allocation4 + $0x388] sm:$0xff] }
 0x206   :  { %1440 = vmatprep.subr.bf16.mxu1 %v1439_v7  ;;  %v764_v7 = vld [vmem:[#allocation4 + $0x398] sm:$0xff] }
 0x207   :  { %v1479_v9 = vpack.c.bf16 %v764_v7, %v762_v6  ;;  %v1053_v6 = vld [vmem:[%s1907_s13 + $0x50] sm:$0xff]  ;;  %v1054_v7 = vld [vmem:[%s1907_s13 + $0x58] sm:$0xff] }
 0x209   :  { %1442 = vmatpush1.bf16.msra.mxu1 %v1441_v12  ;;  %v766_v12 = vld [vmem:[#allocation4 + $0x3a8] sm:$0xff] }
 0x20a   :  { %1444 = vmatprep.subr.bf16.mxu1 %v1443_v13  ;;  %v768_v13 = vld [vmem:[#allocation4 + $0x3b8] sm:$0xff] }
 0x20b   :  { %v1483_v15 = vpack.c.bf16 %v768_v13, %v766_v12  ;;  %v1057_v12 = vld [vmem:[%s1907_s13 + $0x70] sm:$0xff]  ;;  %v1058_v13 = vld [vmem:[%s1907_s13 + $0x78] sm:$0xff] }
 0x20d   :  { %1446 = vmatpush1.bf16.msra.mxu1 %v1445_v21  ;;  %v770_v21 = vld [vmem:[#allocation4 + $0x3c8] sm:$0xff] }
 0x20e   :  { %1448 = vmatprep.subr.bf16.mxu1 %v1447_v22  ;;  %v772_v22 = vld [vmem:[#allocation4 + $0x3d8] sm:$0xff] }
 0x20f   :  { %v1487_v25 = vpack.c.bf16 %v772_v22, %v770_v21 }
 0x211   :  { %1450 = vmatpush1.bf16.msra.mxu1 %v1449_v27  ;;  %v771_v27 = vld [vmem:[#allocation4 + $0x3d0] sm:$0xff] }
 0x212   :  { %1452 = vmatprep.subr.bf16.mxu1 %v1451_v28  ;;  %v774_v28 = vld [vmem:[#allocation4 + $0x3e8] sm:$0xff]  ;;  %v1489_v30 = vpack.c.bf16 %v771_v27, %v769_v26 }
 0x213   :  { %v1491_v32 = vpack.c.bf16 %v776_v29, %v774_v28 }
 0x215   :  { %1454 = vmatpush1.bf16.msra.mxu1 %v1453_v33  ;;  %v773_v33 = vld [vmem:[#allocation4 + $0x3e0] sm:$0xff] }
 0x216   :  { %1456 = vmatprep.subr.bf16.mxu1 %v1455_v34  ;;  %v775_v34 = vld [vmem:[#allocation4 + $0x3f0] sm:$0xff] }
 0x217   :  { %v1493_v35 = vpack.c.bf16 %v775_v34, %v773_v33 }
 0x219   :  { %1458 = vmatpush1.bf16.msra.mxu1 %v1457_v39  ;;  %v1521_v39 = vpack.c.bf16 %v946_v38, %v945_v37 }
 0x21a   :  { %1460 = vmatprep.subr.bf16.mxu1 %v1459_v40  ;;  %v963_v40 = vld [vmem:[#allocation6 + $0xf0] sm:$0xff] }
 0x21b   :  { %1522 = vmatpush3.bf16.msra.mxu0 %v1521_v39  ;;  %v1523_v42 = vpack.c.bf16 %v964_v41, %v963_v40 }
 0x21d   :  { %1462 = vmatpush1.bf16.msra.mxu1 %v1461_v46  ;;  %1524 = vmatprep.subr.bf16.mxu0 %v1523_v42  ;;  %v1653_v46 = vmov 0.0|0.0  }
 0x21e   :  { %1464 = vmatprep.subr.bf16.mxu1 %v1463_v47  ;;  %v782_v47 = vrot.slane %v777_v50, %v1804_v18  ;;  %v1045_v18 = vld [vmem:[%s1907_s13 + $0x10] sm:$0xff] }
 0x21f   :  { %1526 = vmatpush3.bf16.msra.mxu0 %v1525_v45 }
 0x220   :  { %1527 = vmatprep.subr.bf16.mxu0 %v1653_v46 }
 0x221   :  { %1466 = vmatpush1.bf16.msra.mxu1 %v1465_v53  ;;  %v1043_v53 = vld [vmem:[%s1907_s13] sm:$0xff] }
 0x222   :  { %1468 = vmatprep.subr.bf16.mxu1 %v1467_v54  ;;  %v1044_v54 = vld [vmem:[%s1907_s13 + $0x8] sm:$0xff] }
 0x223   :  { %v1528_v57 = vpack.c.bf16 %v1044_v54, %v1043_v53 }
 0x225   :  { %1470 = vmatpush1.bf16.msra.mxu1 %v1469_v59  ;;  %v1531_v59 = vpack.c.bf16 %v1046_v20, %v1045_v18 }
 0x226   :  { %1472 = vmatprep.subr.bf16.mxu1 %v1471_v60  ;;  %v1047_v60 = vld [vmem:[%s1907_s13 + $0x20] sm:$0xff] }
 0x227   :  { %v1534_v62 = vpack.c.bf16 %v1048_v61, %v1047_v60 }
 0x229   :  { %1474 = vmatpush1.bf16.msra.mxu1 %v1473_v2  ;;  %v1537_v2 = vpack.c.bf16 %v1050_v1, %v1049_v63 }
 0x22a   :  { %1476 = vmatprep.subr.bf16.mxu1 %v1475_v3  ;;  %v1051_v3 = vld [vmem:[%s1907_s13 + $0x40] sm:$0xff] }
 0x22b   :  { %v1540_v5 = vpack.c.bf16 %v1052_v4, %v1051_v3 }
 0x22d   :  { %1478 = vmatpush1.bf16.msra.mxu1 %v1477_v8  ;;  %v1543_v8 = vpack.c.bf16 %v1054_v7, %v1053_v6 }
 0x22e   :  { %1480 = vmatprep.subr.bf16.mxu1 %v1479_v9  ;;  %v1055_v9 = vld [vmem:[%s1907_s13 + $0x60] sm:$0xff] }
 0x22f   :  { %v1546_v11 = vpack.c.bf16 %v1056_v10, %v1055_v9 }
 0x231   :  { %1482 = vmatpush1.bf16.msra.mxu1 %v1481_v14  ;;  %v1549_v14 = vpack.c.bf16 %v1058_v13, %v1057_v12 }
 0x232   :  { %1484 = vmatprep.subr.bf16.mxu1 %v1483_v15 }
 0x235   :  { %1486 = vmatpush1.bf16.msra.mxu1 %v1485_v23 }
 0x236   :  { %1488 = vmatprep.subr.bf16.mxu1 %v1487_v25 }
 0x239   :  { %1490 = vmatpush1.bf16.msra.mxu1 %v1489_v30 }
 0x23a   :  { %1492 = vmatprep.subr.bf16.mxu1 %v1491_v32 }
 0x23d   :  { %1494 = vmatpush1.bf16.msra.mxu1 %v1493_v35 }
 0x240   :  { %925 = vmatmul.mubr.f32.vlgmr.msra.gmra.mrb[2].mxu1 %v647_v17 }
 0x313   :  { %v926_v49 = vpop.f32.mrb[2].mxu1 }
 0x314   :  { %v1551_v51 = vadd.f32 %v926_v49, %v782_v47  ;;  %v928_v52 = vpop.f32.mrb[3].mxu1 }
 0x315   :  { %v1552_v55 = vadd.f32 %v928_v52, %v786_v48 }
 0x316   :  { %v931_v58 = vmax.f32 %v1551_v51, 0.0 }
 0x317   :  { %v932_v56 = vmax.f32 %v1552_v55, 0.0 }
 0x319   :  { %1036 = vmatprep.mubr.f32.mxu0 %v932_v56 }
 0x31a   :  { %1037 = vmatmul.mubr.f32.vlgmr.msra.gmra.mrb[4].mxu0 %v931_v58 }
 0x31b   :  { %1529 = vmatpush3.bf16.msra.mxu0 %v1528_v57  ;;  %1236 = vmatprep.mubr.msk.f32.mxu0 %vm1654_vm3, %v1652_v0 }
 0x31c   :  { %1530 = vmatprep.subr.bf16.mxu0 %v1653_v46 }
 0x31f   :  { %1532 = vmatpush3.bf16.msra.mxu0 %v1531_v59 }
 0x320   :  { %1533 = vmatprep.subr.bf16.mxu0 %v1653_v46 }
 0x323   :  { %1535 = vmatpush3.bf16.msra.mxu0 %v1534_v62 }
 0x324   :  { %1536 = vmatprep.subr.bf16.mxu0 %v1653_v46 }
 0x327   :  { %1538 = vmatpush3.bf16.msra.mxu0 %v1537_v2 }
 0x328   :  { %1539 = vmatprep.subr.bf16.mxu0 %v1653_v46 }
 0x32b   :  { %1541 = vmatpush3.bf16.msra.mxu0 %v1540_v5 }
 0x32c   :  { %1542 = vmatprep.subr.bf16.mxu0 %v1653_v46 }
 0x32f   :  { %1544 = vmatpush3.bf16.msra.mxu0 %v1543_v8 }
 0x330   :  { %1545 = vmatprep.subr.bf16.mxu0 %v1653_v46 }
 0x333   :  { %1547 = vmatpush3.bf16.msra.mxu0 %v1546_v11 }
 0x334   :  { %1548 = vmatprep.subr.bf16.mxu0 %v1653_v46 }
 0x337   :  { %1550 = vmatpush3.bf16.msra.mxu0 %v1549_v14 }
 0x3ed   :  { %v1184_v15 = vpop.f32.mrb[4].mxu0 }
 0x3ee   :  { %v1185_v19 = vpop.f32.mrb[5].mxu0 }
 0x3ef   :  { %v1186_v21 = vadd.f32 %v1185_v19, %v1184_v15 }
 0x3f1   :  { %v1039_v22 = vadd.f32 %v1186_v21, %v1150_v16 }
 0x3f3   :  { %v1042_v23 = vmax.f32 %v1039_v22, 0.0 }
 0x3f5   :  { %1237 = vmatmul.mubr.f32.vlgmr.msra.gmra.mrb[6].mxu0 %v1042_v23 }
 0x4c8   :  { %v1132_v25 = vpop.f32.mrb[6].mxu0 }
 0x4c9   :  { %v1133_v26 = vadd.f32 %v1151_v24, %v1132_v25  ;;  %v1238_v27 = vpop.f32.mrb[7].mxu0 }
 0x4cb   :  { %1136 = vst.msk [vmem:[%s1909_s15] sm:$0xff] %vm98_vm1, %v1133_v26 }
 0x4cc   :  { %1141 = vsyncpa [#allocation3], 1 }
 0x4cd   :  { %1142 = vsyncpa [#allocation5], 1 }

</bundles_post_ra>
